<compile_context>
chip_gen: v7x
topology: tpu7x:2x2x1
jax: 0.10.0
libtpu: 0.0.40
codegen_flags: <defaults>
</compile_context>

<pallas_src>
import functools
import math

import jax
import jax.numpy as jnp
from jax.experimental import pallas as pl
from jax.experimental.pallas import tpu as pltpu

_LANE = 128
_PAD = 256   # padding multiple for K / hidden N dims (divisor-friendly tiling)


def _round_up(x, m):
    return (x + m - 1) // m * m


def _chip_config():
    """Generation-aware weight-tile / VMEM budgets.

    v5e / v6e: 128 MiB physical VMEM -> big weight tiles, high vmem limit.
    v7x:       64 MiB VMEM, 2 TensorCores -> smaller tiles, prefer >= 2 blocks
               along N so the weight stream is split across both cores.
    """
    vmem_cap = None
    try:
        vmem_cap = int(pltpu.get_tpu_info().vmem_capacity_bytes)
    except Exception:
        pass
    kind = ""
    try:
        kind = jax.devices()[0].device_kind.lower()
    except Exception:
        pass
    is_v7 = ("v7" in kind) or (vmem_cap is not None and vmem_cap <= 96 * 1024 * 1024)
    if is_v7:
        return dict(weight_tile_bytes=8 * 1024 * 1024,
                    vmem_limit_bytes=48 * 1024 * 1024,
                    prefer_two_n_blocks=True)
    return dict(weight_tile_bytes=16 * 1024 * 1024,
                vmem_limit_bytes=88 * 1024 * 1024,
                prefer_two_n_blocks=False)


def _pick_tn(k_p, n_p, itemsize, budget, prefer_two_n_blocks):
    """Largest lane-multiple divisor of n_p whose (k_p, tn) tile fits `budget`."""
    cands = [t for t in range(_LANE, n_p + 1, _LANE) if n_p % t == 0]
    fitting = [t for t in cands if k_p * t * itemsize <= budget] or [_LANE]
    tn = max(fitting)
    if prefer_two_n_blocks and n_p // tn < 2:
        two = [t for t in fitting if n_p // t >= 2]
        if two:
            tn = max(two)
    return tn


def _quantize_per_col(w):
    """Per-output-channel symmetric int8 quantization of a (K, N) weight."""
    amax = jnp.max(jnp.abs(w), axis=0, keepdims=True)                # (1, N)
    scale = jnp.where(amax > 0, amax / 127.0, 1.0).astype(jnp.float32)
    q = jnp.clip(jnp.round(w / scale), -127, 127).astype(jnp.int8)
    return q, scale


def _pack_weight(q, tn):
    """(K, N) int8 -> (N//tn, K, tn): each streamed tile is contiguous in HBM."""
    k_p, n_p = q.shape
    nb = n_p // tn
    return q.reshape(k_p, nb, tn).transpose(1, 0, 2)


def init_linear_params(key, in_features, out_features, k_p, n_p):
    """torch.nn.Linear-style init (U(+-1/sqrt(fan_in))), zero-padded to (k_p, n_p),
    stored transposed (in, out) and int8-quantized per output channel."""
    kw, kb = jax.random.split(key)
    bound = 1.0 / math.sqrt(in_features)
    w_t = jax.random.uniform(kw, (in_features, out_features), jnp.float32, -bound, bound)
    b = jax.random.uniform(kb, (out_features,), jnp.float32, -bound, bound)
    w_t = jnp.pad(w_t, ((0, k_p - in_features), (0, n_p - out_features)))
    b = jnp.pad(b, (0, n_p - out_features))
    q, scale = _quantize_per_col(w_t)
    return q, scale, b.reshape(1, n_p).astype(jnp.float32)


def init_model_params(key, in_features, h1, h2, out_features, cfg):
    k1, k2, k3 = jax.random.split(key, 3)
    in_p = _round_up(in_features, _PAD)
    h1_p = _round_up(h1, _PAD)
    h2_p = _round_up(h2, _PAD)
    out_p = _round_up(out_features, _LANE)        # final layer padded to lane width only
    q1, s1, b1 = init_linear_params(k1, in_features, h1, in_p, h1_p)
    q2, s2, b2 = init_linear_params(k2, h1, h2, h1_p, h2_p)
    q3, s3, b3 = init_linear_params(k3, h2, out_features, h2_p, out_p)
    tn1 = _pick_tn(in_p, h1_p, 1, cfg["weight_tile_bytes"], cfg["prefer_two_n_blocks"])
    tn2 = _pick_tn(h1_p, h2_p, 1, cfg["weight_tile_bytes"], cfg["prefer_two_n_blocks"])
    w1p = _pack_weight(q1, tn1)
    w2p = _pack_weight(q2, tn2)
    # Layer-3 weight stays (h2_p, out_p): the fused kernel streams it in contiguous
    # row blocks matching layer-2's output tile.
    return (w1p, s1, b1), (w2p, s2, b2), (q3, s3, b3)


# ----------------------------- layer 1 kernel ------------------------------ #

def _linear_kernel(x_ref, w_ref, s_ref, b_ref, o_ref, *, activation):
    w = w_ref[...].astype(jnp.bfloat16)            # int8 -> bf16 (VPU, hidden under DMA)
    y = jnp.dot(x_ref[...], w, preferred_element_type=jnp.float32)
    y = y * s_ref[...] + b_ref[...]                # per-column dequant scale + bias
    if activation == "relu":
        y = jnp.maximum(y, 0.0)
    o_ref[...] = y.astype(o_ref.dtype)


def pallas_linear(x, w_packed, scale, bias, *, activation, out_dtype, cfg, tm=None):
    M, K = x.shape
    nb, K_w, tn = w_packed.shape
    assert K == K_w
    N = nb * tn
    tm = M if tm is None else tm
    assert M % tm == 0
    mb = M // tm

    # VMEM estimate: 2x int8 tile (double buffered) + bf16 upcast temp + resident
    # activations + double-buffered output tile + scale/bias.
    est = (2 * K * tn + 2 * K * tn + 2 * tm * K
           + 2 * tm * tn * jnp.dtype(out_dtype).itemsize + 16 * tn)
    assert est < cfg["vmem_limit_bytes"], ("weight tile too large for VMEM", est)

    if mb == 1:                                    # tiny batch: 1-D grid over N so the
        grid = (nb,)                               # megacore-sharded axis is the weight stream
        dims = ("parallel",)
        x_map = lambda j: (0, 0)
        w_map = lambda j: (j, 0, 0)
        sb_map = lambda j: (0, j)
        o_map = lambda j: (0, j)
    else:                                          # N first, M inner (weight tile stays resident)
        grid = (nb, mb)
        dims = ("parallel", "parallel")
        x_map = lambda j, i: (i, 0)
        w_map = lambda j, i: (j, 0, 0)
        sb_map = lambda j, i: (0, j)
        o_map = lambda j, i: (i, j)

    cost = pl.CostEstimate(
        flops=2 * M * K * N, transcendentals=0,
        bytes_accessed=K * N + 2 * M * K + 2 * M * N + 8 * N)

    kernel = functools.partial(_linear_kernel, activation=activation)
    return pl.pallas_call(
        kernel,
        out_shape=jax.ShapeDtypeStruct((M, N), out_dtype),
        grid_spec=pltpu.PrefetchScalarGridSpec(
            num_scalar_prefetch=0,
            grid=grid,
            in_specs=[
                pl.BlockSpec((tm, K), x_map),           # activations (resident)
                pl.BlockSpec((None, K, tn), w_map),     # contiguous int8 weight slab
                pl.BlockSpec((1, tn), sb_map),          # per-column scale
                pl.BlockSpec((1, tn), sb_map),          # bias
            ],
            out_specs=pl.BlockSpec((tm, tn), o_map),
        ),
        compiler_params=pltpu.CompilerParams(
            dimension_semantics=dims,
            vmem_limit_bytes=cfg["vmem_limit_bytes"],
        ),
        cost_estimate=cost,
    )(x, w_packed, scale, bias)


# --------------------------- fused fc2 + out kernel ------------------------ #

def _fused_fc2_out_kernel(h1_ref, w2_ref, s2_ref, b2_ref, w3_ref, s3_ref, b3_ref,
                          o_ref, acc_ref, *, j_axis):
    j = pl.program_id(j_axis)

    @pl.when(j == 0)
    def _():
        acc_ref[...] = jnp.zeros_like(acc_ref)

    w2 = w2_ref[...].astype(jnp.bfloat16)
    h2 = jnp.dot(h1_ref[...], w2, preferred_element_type=jnp.float32)
    h2 = jnp.maximum(h2 * s2_ref[...] + b2_ref[...], 0.0)
    w3 = w3_ref[...].astype(jnp.bfloat16)
    acc_ref[...] += jnp.dot(h2.astype(jnp.bfloat16), w3,
                            preferred_element_type=jnp.float32)

    @pl.when(j == pl.num_programs(j_axis) - 1)
    def _():
        o_ref[...] = (acc_ref[...] * s3_ref[...] + b3_ref[...]).astype(o_ref.dtype)


def pallas_fused_fc2_out(h1, w2_packed, s2, b2, w3q, s3, b3, *, out_dtype, cfg, tm=None):
    M, K2 = h1.shape
    nb2, K2w, tn2 = w2_packed.shape
    assert K2 == K2w
    N2 = nb2 * tn2
    K3, N3 = w3q.shape
    assert K3 == N2
    tm = M if tm is None else tm
    assert M % tm == 0
    mb = M // tm

    est = (2 * K2 * tn2 + 2 * K2 * tn2 + 2 * tm * K2 + 2 * tn2 * N3
           + 4 * tm * N3 * 2 + 16 * (tn2 + N3))
    assert est < cfg["vmem_limit_bytes"], ("fused tile too large for VMEM", est)

    if mb == 1:
        grid = (nb2,)
        dims = ("arbitrary",)                      # reduction over layer-2 output blocks
        j_axis = 0
        h1_map = lambda j: (0, 0)
        w2_map = lambda j: (j, 0, 0)
        sb2_map = lambda j: (0, j)
        w3_map = lambda j: (j, 0)
        sb3_map = lambda j: (0, 0)
        o_map = lambda j: (0, 0)
    else:
        grid = (mb, nb2)
        dims = ("parallel", "arbitrary")
        j_axis = 1
        h1_map = lambda i, j: (i, 0)
        w2_map = lambda i, j: (j, 0, 0)
        sb2_map = lambda i, j: (0, j)
        w3_map = lambda i, j: (j, 0)
        sb3_map = lambda i, j: (0, 0)
        o_map = lambda i, j: (i, 0)

    cost = pl.CostEstimate(
        flops=2 * M * (K2 * N2 + N2 * N3), transcendentals=0,
        bytes_accessed=K2 * N2 + N2 * N3 + 2 * M * K2 + 4 * M * N3 + 8 * (N2 + N3))

    kernel = functools.partial(_fused_fc2_out_kernel, j_axis=j_axis)
    return pl.pallas_call(
        kernel,
        out_shape=jax.ShapeDtypeStruct((M, N3), out_dtype),
        grid_spec=pltpu.PrefetchScalarGridSpec(
            num_scalar_prefetch=0,
            grid=grid,
            in_specs=[
                pl.BlockSpec((tm, K2), h1_map),          # fc1 activations (resident)
                pl.BlockSpec((None, K2, tn2), w2_map),   # fc2 int8 weight slab
                pl.BlockSpec((1, tn2), sb2_map),         # fc2 scale
                pl.BlockSpec((1, tn2), sb2_map),         # fc2 bias
                pl.BlockSpec((tn2, N3), w3_map),         # out-layer row block (contiguous)
                pl.BlockSpec((1, N3), sb3_map),          # out scale
                pl.BlockSpec((1, N3), sb3_map),          # out bias
            ],
            out_specs=pl.BlockSpec((tm, N3), o_map),     # resident accumulator output
            scratch_shapes=[pltpu.VMEM((tm, N3), jnp.float32)],
        ),
        compiler_params=pltpu.CompilerParams(
            dimension_semantics=dims,
            vmem_limit_bytes=cfg["vmem_limit_bytes"],
        ),
        cost_estimate=cost,
    )(h1, w2_packed, s2, b2, w3q, s3, b3)


# --------------------------------- forward --------------------------------- #

def model_forward(params, x, out_features=2, cfg=None):
    """fc1 -> relu -> (fc2 -> relu -> out fused); padded columns are numerically
    inert (zero weights / bias, relu(0)=0); only the final output is sliced."""
    cfg = cfg if cfg is not None else _chip_config()
    (w1p, s1, b1), (w2p, s2, b2), (w3q, s3, b3) = params
    M = x.shape[0]
    K1 = w1p.shape[1]
    if x.shape[1] != K1:
        x = jnp.pad(x, ((0, 0), (0, K1 - x.shape[1])))
    if M <= 256:
        tm = M
    else:
        tm = 256
        mp = _round_up(M, tm)
        x = jnp.pad(x, ((0, mp - M), (0, 0)))
    h = x.astype(jnp.bfloat16)
    h1 = pallas_linear(h, w1p, s1, b1, activation="relu",
                       out_dtype=jnp.bfloat16, cfg=cfg, tm=tm)
    y = pallas_fused_fc2_out(h1, w2p, s2, b2, w3q, s3, b3,
                             out_dtype=jnp.float32, cfg=cfg, tm=tm)
    return y[:M, :out_features]


if __name__ == "__main__":
    # Small TPU-friendly shapes consistent with the module (in -> in/2 -> in/4 -> 2).
    # The real 12000/6000/3000 sizes also work thanks to padding at init.
    batch = 8
    in_features = 512
    h1 = in_features // 2     # 256
    h2 = in_features // 4     # 128
    out_features = 2

    cfg = _chip_config()
    key = jax.random.PRNGKey(0)
    kx, kp = jax.random.split(key)
    x = jax.random.normal(kx, (batch, in_features), jnp.float32)
    params = init_model_params(kp, in_features, h1, h2, out_features, cfg)

    fwd = jax.jit(functools.partial(model_forward, out_features=out_features, cfg=cfg))
    y = fwd(params, x)
    jax.block_until_ready(y)

    # Pure-JAX reference mirroring the kernel math (int8 per-column quantized
    # weights, bf16 matmuls, f32 accumulation / epilogue).
    def ref_forward(params, x):
        (w1p, s1, b1), (w2p, s2, b2), (w3q, s3, b3) = params

        def unpack(wp):
            nb, k, tn = wp.shape
            return wp.transpose(1, 0, 2).reshape(k, nb * tn)

        def layer(h, q, s, b, relu):
            y = jnp.dot(h.astype(jnp.bfloat16), q.astype(jnp.bfloat16),
                        preferred_element_type=jnp.float32) * s + b
            return jnp.maximum(y, 0.0) if relu else y

        K1 = w1p.shape[1]
        h = jnp.pad(x, ((0, 0), (0, K1 - x.shape[1])))
        h = layer(h, unpack(w1p), s1, b1, True)
        h = layer(h, unpack(w2p), s2, b2, True)
        yr = layer(h, w3q, s3, b3, False)
        return yr[:, :out_features]

    r = ref_forward(params, x)
    assert y.shape == (batch, out_features)
    assert jnp.allclose(y, r, atol=2e-2, rtol=2e-2)

    print("KERNEL_OK")
</pallas_src>

<mosaic_0001>
module attributes {stable_mosaic.version = 11 : i64} {
  func.func @_fused_fc2_out_kernel(%arg0: i32, %arg1: memref<8x256xbf16, #tpu.memory_space<vmem>>, %arg2: memref<1x256x256xi8, #tpu.memory_space<vmem>>, %arg3: memref<1x256xf32, #tpu.memory_space<vmem>>, %arg4: memref<1x256xf32, #tpu.memory_space<vmem>>, %arg5: memref<256x128xi8, #tpu.memory_space<vmem>>, %arg6: memref<1x128xf32, #tpu.memory_space<vmem>>, %arg7: memref<1x128xf32, #tpu.memory_space<vmem>>, %arg8: memref<8x128xf32, #tpu.memory_space<vmem>>, %arg9: memref<8x128xf32, #tpu.memory_space<vmem>>) attributes {dimension_semantics = [#tpu.dimension_semantics<arbitrary>], iteration_bounds = array<i64: 1>, scalar_prefetch = 0 : i64, scratch_operands = 1 : i64, tpu.core_type = #tpu.core_type<tc>, window_params = [{pipeline_mode = #tpu.pipeline_mode<synchronous>, transform_indices = @transform_0, window_bounds = array<i64: 8, 256>}, {transform_indices = @transform_1, window_bounds = array<i64: 1, 256, 256>}, {transform_indices = @transform_2, window_bounds = array<i64: 1, 256>}, {transform_indices = @transform_3, window_bounds = array<i64: 1, 256>}, {transform_indices = @transform_4, window_bounds = array<i64: 256, 128>}, {pipeline_mode = #tpu.pipeline_mode<synchronous>, transform_indices = @transform_5, window_bounds = array<i64: 1, 128>}, {pipeline_mode = #tpu.pipeline_mode<synchronous>, transform_indices = @transform_6, window_bounds = array<i64: 1, 128>}, {pipeline_mode = #tpu.pipeline_mode<synchronous>, transform_indices = @transform_7, window_bounds = array<i64: 8, 128>}]} {
    %c0_i32 = arith.constant 0 : i32
    %0 = arith.cmpi eq, %arg0, %c0_i32 : i32
    %1 = arith.extui %0 : i1 to i32
    %c0_i32_0 = arith.constant 0 : i32
    %2 = arith.cmpi ne, %1, %c0_i32_0 : i32
    scf.if %2 {
      %cst_19 = arith.constant 0.000000e+00 : f32
      %26 = vector.broadcast %cst_19 : f32 to vector<8x128xf32>
      %c0_20 = arith.constant 0 : index
      %c0_21 = arith.constant 0 : index
      %27 = vector.load %arg9[%c0_20, %c0_21] : memref<8x128xf32, #tpu.memory_space<vmem>>, vector<8x128xf32>
      tpu.vector_store %arg9[%c0_20, %c0_21], %26 {strides = array<i32>} : memref<8x128xf32, #tpu.memory_space<vmem>>, vector<8x128xf32>,
    } else {
    }
    %c0 = arith.constant 0 : index
    %c0_1 = arith.constant 0 : index
    %c0_2 = arith.constant 0 : index
    %3 = vector.load %arg2[%c0, %c0_1, %c0_2] : memref<1x256x256xi8, #tpu.memory_space<vmem>>, vector<1x256x256xi8>
    %4 = vector.shape_cast %3 : vector<1x256x256xi8> to vector<256x256xi8>
    %5 = arith.sitofp %4 : vector<256x256xi8> to vector<256x256xbf16>
    %c0_3 = arith.constant 0 : index
    %c0_4 = arith.constant 0 : index
    %6 = vector.load %arg1[%c0_3, %c0_4] : memref<8x256xbf16, #tpu.memory_space<vmem>>, vector<8x256xbf16>
    %cst = arith.constant dense<0.000000e+00> : vector<8x256xf32>
    %7 = tpu.matmul %6, %5, %cst {dimension_numbers = #tpu.dot_dimension_numbers<[1], [0], [0], [1], [0, 0, 1, 1], [], []>} : vector<8x256xbf16>, vector<256x256xbf16>, vector<8x256xf32> -> vector<8x256xf32>
    %c0_5 = arith.constant 0 : index
    %c0_6 = arith.constant 0 : index
    %8 = vector.load %arg3[%c0_5, %c0_6] : memref<1x256xf32, #tpu.memory_space<vmem>>, vector<1x256xf32>
    %9 = vector.broadcast %8 : vector<1x256xf32> to vector<8x256xf32>
    %10 = arith.mulf %7, %9 : vector<8x256xf32>
    %c0_7 = arith.constant 0 : index
    %c0_8 = arith.constant 0 : index
    %11 = vector.load %arg4[%c0_7, %c0_8] : memref<1x256xf32, #tpu.memory_space<vmem>>, vector<1x256xf32>
    %12 = vector.broadcast %11 : vector<1x256xf32> to vector<8x256xf32>
    %13 = arith.addf %10, %12 : vector<8x256xf32>
    %cst_9 = arith.constant 0.000000e+00 : f32
    %14 = vector.broadcast %cst_9 : f32 to vector<8x256xf32>
    %15 = arith.maximumf %13, %14 : vector<8x256xf32>
    %c0_10 = arith.constant 0 : index
    %c0_11 = arith.constant 0 : index
    %16 = vector.load %arg5[%c0_10, %c0_11] : memref<256x128xi8, #tpu.memory_space<vmem>>, vector<256x128xi8>
    %17 = arith.sitofp %16 : vector<256x128xi8> to vector<256x128xbf16>
    %c0_12 = arith.constant 0 : index
    %c0_13 = arith.constant 0 : index
    %18 = vector.load %arg9[%c0_12, %c0_13] : memref<8x128xf32, #tpu.memory_space<vmem>>, vector<8x128xf32>
    %19 = arith.truncf %15 : vector<8x256xf32> to vector<8x256xbf16>
    %cst_14 = arith.constant dense<0.000000e+00> : vector<8x128xf32>
    %20 = tpu.matmul %19, %17, %cst_14 {dimension_numbers = #tpu.dot_dimension_numbers<[1], [0], [0], [1], [0, 0, 1, 1], [], []>} : vector<8x256xbf16>, vector<256x128xbf16>, vector<8x128xf32> -> vector<8x128xf32>
    %21 = arith.addf %18, %20 : vector<8x128xf32>
    %c0_15 = arith.constant 0 : index
    %c0_16 = arith.constant 0 : index
    %22 = vector.load %arg9[%c0_15, %c0_16] : memref<8x128xf32, #tpu.memory_space<vmem>>, vector<8x128xf32>
    tpu.vector_store %arg9[%c0_15, %c0_16], %21 {strides = array<i32>} : memref<8x128xf32, #tpu.memory_space<vmem>>, vector<8x128xf32>,
    %c0_i32_17 = arith.constant 0 : i32
    %23 = arith.cmpi eq, %arg0, %c0_i32_17 : i32
    %24 = arith.extui %23 : i1 to i32
    %c0_i32_18 = arith.constant 0 : i32
    %25 = arith.cmpi ne, %24, %c0_i32_18 : i32
    scf.if %25 {
      %c0_19 = arith.constant 0 : index
      %c0_20 = arith.constant 0 : index
      %26 = vector.load %arg9[%c0_19, %c0_20] : memref<8x128xf32, #tpu.memory_space<vmem>>, vector<8x128xf32>
      %c0_21 = arith.constant 0 : index
      %c0_22 = arith.constant 0 : index
      %27 = vector.load %arg6[%c0_21, %c0_22] : memref<1x128xf32, #tpu.memory_space<vmem>>, vector<1x128xf32>
      %28 = vector.broadcast %27 : vector<1x128xf32> to vector<8x128xf32>
      %29 = arith.mulf %26, %28 : vector<8x128xf32>
      %c0_23 = arith.constant 0 : index
      %c0_24 = arith.constant 0 : index
      %30 = vector.load %arg7[%c0_23, %c0_24] : memref<1x128xf32, #tpu.memory_space<vmem>>, vector<1x128xf32>
      %31 = vector.broadcast %30 : vector<1x128xf32> to vector<8x128xf32>
      %32 = arith.addf %29, %31 : vector<8x128xf32>
      %c0_25 = arith.constant 0 : index
      %c0_26 = arith.constant 0 : index
      %33 = vector.load %arg8[%c0_25, %c0_26] : memref<8x128xf32, #tpu.memory_space<vmem>>, vector<8x128xf32>
      tpu.vector_store %arg8[%c0_25, %c0_26], %32 {strides = array<i32>} : memref<8x128xf32, #tpu.memory_space<vmem>>, vector<8x128xf32>,
    } else {
    }
    return
  }
  func.func @transform_0(%arg0: i32) -> (i32, i32) {
    %c0_i32 = arith.constant 0 : i32
    %c0_i32_0 = arith.constant 0 : i32
    %c0_i32_1 = arith.constant 0 : i32
    return %c0_i32, %c0_i32_0 : i32, i32
  }
  func.func @transform_1(%arg0: i32) -> (i32, i32, i32) {
    %c0_i32 = arith.constant 0 : i32
    %c0_i32_0 = arith.constant 0 : i32
    %c0_i32_1 = arith.constant 0 : i32
    return %arg0, %c0_i32, %c0_i32_0 : i32, i32, i32
  }
  func.func @transform_2(%arg0: i32) -> (i32, i32) {
    %c0_i32 = arith.constant 0 : i32
    %c0_i32_0 = arith.constant 0 : i32
    return %c0_i32, %arg0 : i32, i32
  }
  func.func @transform_3(%arg0: i32) -> (i32, i32) {
    %c0_i32 = arith.constant 0 : i32
    %c0_i32_0 = arith.constant 0 : i32
    return %c0_i32, %arg0 : i32, i32
  }
  func.func @transform_4(%arg0: i32) -> (i32, i32) {
    %c0_i32 = arith.constant 0 : i32
    %c0_i32_0 = arith.constant 0 : i32
    return %arg0, %c0_i32 : i32, i32
  }
  func.func @transform_5(%arg0: i32) -> (i32, i32) {
    %c0_i32 = arith.constant 0 : i32
    %c0_i32_0 = arith.constant 0 : i32
    %c0_i32_1 = arith.constant 0 : i32
    return %c0_i32, %c0_i32_0 : i32, i32
  }
  func.func @transform_6(%arg0: i32) -> (i32, i32) {
    %c0_i32 = arith.constant 0 : i32
    %c0_i32_0 = arith.constant 0 : i32
    %c0_i32_1 = arith.constant 0 : i32
    return %c0_i32, %c0_i32_0 : i32, i32
  }
  func.func @transform_7(%arg0: i32) -> (i32, i32) {
    %c0_i32 = arith.constant 0 : i32
    %c0_i32_0 = arith.constant 0 : i32
    %c0_i32_1 = arith.constant 0 : i32
    return %c0_i32, %c0_i32_0 : i32, i32
  }
}

module attributes {stable_mosaic.version = 11 : i64} {
  func.func @_linear_kernel(%arg0: i32, %arg1: memref<8x512xbf16, #tpu.memory_space<vmem>>, %arg2: memref<1x512x256xi8, #tpu.memory_space<vmem>>, %arg3: memref<1x256xf32, #tpu.memory_space<vmem>>, %arg4: memref<1x256xf32, #tpu.memory_space<vmem>>, %arg5: memref<8x256xbf16, #tpu.memory_space<vmem>>) attributes {dimension_semantics = [#tpu.dimension_semantics<parallel>], iteration_bounds = array<i64: 1>, scalar_prefetch = 0 : i64, scratch_operands = 0 : i64, tpu.core_type = #tpu.core_type<tc>, window_params = [{pipeline_mode = #tpu.pipeline_mode<synchronous>, transform_indices = @transform_0, window_bounds = array<i64: 8, 512>}, {transform_indices = @transform_1, window_bounds = array<i64: 1, 512, 256>}, {transform_indices = @transform_2, window_bounds = array<i64: 1, 256>}, {transform_indices = @transform_3, window_bounds = array<i64: 1, 256>}, {transform_indices = @transform_4, window_bounds = array<i64: 8, 256>}]} {
    %c0 = arith.constant 0 : index
    %c0_0 = arith.constant 0 : index
    %c0_1 = arith.constant 0 : index
    %0 = vector.load %arg2[%c0, %c0_0, %c0_1] : memref<1x512x256xi8, #tpu.memory_space<vmem>>, vector<1x512x256xi8>
    %1 = vector.shape_cast %0 : vector<1x512x256xi8> to vector<512x256xi8>
    %2 = arith.sitofp %1 : vector<512x256xi8> to vector<512x256xbf16>
    %c0_2 = arith.constant 0 : index
    %c0_3 = arith.constant 0 : index
    %3 = vector.load %arg1[%c0_2, %c0_3] : memref<8x512xbf16, #tpu.memory_space<vmem>>, vector<8x512xbf16>
    %cst = arith.constant dense<0.000000e+00> : vector<8x256xf32>
    %4 = tpu.matmul %3, %2, %cst {dimension_numbers = #tpu.dot_dimension_numbers<[1], [0], [0], [1], [0, 0, 1, 1], [], []>} : vector<8x512xbf16>, vector<512x256xbf16>, vector<8x256xf32> -> vector<8x256xf32>
    %c0_4 = arith.constant 0 : index
    %c0_5 = arith.constant 0 : index
    %5 = vector.load %arg3[%c0_4, %c0_5] : memref<1x256xf32, #tpu.memory_space<vmem>>, vector<1x256xf32>
    %6 = vector.broadcast %5 : vector<1x256xf32> to vector<8x256xf32>
    %7 = arith.mulf %4, %6 : vector<8x256xf32>
    %c0_6 = arith.constant 0 : index
    %c0_7 = arith.constant 0 : index
    %8 = vector.load %arg4[%c0_6, %c0_7] : memref<1x256xf32, #tpu.memory_space<vmem>>, vector<1x256xf32>
    %9 = vector.broadcast %8 : vector<1x256xf32> to vector<8x256xf32>
    %10 = arith.addf %7, %9 : vector<8x256xf32>
    %cst_8 = arith.constant 0.000000e+00 : f32
    %11 = vector.broadcast %cst_8 : f32 to vector<8x256xf32>
    %12 = arith.maximumf %10, %11 : vector<8x256xf32>
    %13 = arith.truncf %12 : vector<8x256xf32> to vector<8x256xbf16>
    %c0_9 = arith.constant 0 : index
    %c0_10 = arith.constant 0 : index
    %14 = vector.load %arg5[%c0_9, %c0_10] : memref<8x256xbf16, #tpu.memory_space<vmem>>, vector<8x256xbf16>
    tpu.vector_store %arg5[%c0_9, %c0_10], %13 {strides = array<i32>} : memref<8x256xbf16, #tpu.memory_space<vmem>>, vector<8x256xbf16>,
    return
  }
  func.func @transform_0(%arg0: i32) -> (i32, i32) {
    %c0_i32 = arith.constant 0 : i32
    %c0_i32_0 = arith.constant 0 : i32
    %c0_i32_1 = arith.constant 0 : i32
    return %c0_i32, %c0_i32_0 : i32, i32
  }
  func.func @transform_1(%arg0: i32) -> (i32, i32, i32) {
    %c0_i32 = arith.constant 0 : i32
    %c0_i32_0 = arith.constant 0 : i32
    %c0_i32_1 = arith.constant 0 : i32
    return %arg0, %c0_i32, %c0_i32_0 : i32, i32, i32
  }
  func.func @transform_2(%arg0: i32) -> (i32, i32) {
    %c0_i32 = arith.constant 0 : i32
    %c0_i32_0 = arith.constant 0 : i32
    return %c0_i32, %arg0 : i32, i32
  }
  func.func @transform_3(%arg0: i32) -> (i32, i32) {
    %c0_i32 = arith.constant 0 : i32
    %c0_i32_0 = arith.constant 0 : i32
    return %c0_i32, %arg0 : i32, i32
  }
  func.func @transform_4(%arg0: i32) -> (i32, i32) {
    %c0_i32 = arith.constant 0 : i32
    %c0_i32_0 = arith.constant 0 : i32
    return %c0_i32, %arg0 : i32, i32
  }
}

</mosaic_0001>

<bundles_post_ra>
// kernel: model_forward.3
= control target key start
LH: loop header
LB: loop body
LE: loop exit
PB: predicated region body
PF: predicated region fallthrough
CT: control target
= control target key end

     0   :  { %12 = vsyncpa [#allocation4], 0  ;;  %s733_s0 = inlined_call_operand.hbm [shape: bf16[8,256], index: 0, kind: input, shape index: {}]   ;;  %s734_s1 = inlined_call_operand.hbm [shape: s8[1,256,256], index: 1, kind: input, shape index: {}]   ;;  %s735_s2 = inlined_call_operand.hbm [shape: f32[1,256], index: 2, kind: input, shape index: {}]   ;;  %s736_s3 = inlined_call_operand.hbm [shape: f32[1,256], index: 3, kind: input, shape index: {}]   ;;  %s737_s4 = inlined_call_operand.hbm [shape: s8[256,128], index: 4, kind: input, shape index: {}]   ;;  %s738_s5 = inlined_call_operand.hbm [shape: f32[1,128], index: 5, kind: input, shape index: {}]   ;;  %s739_s6 = inlined_call_operand.hbm [shape: f32[1,128], index: 6, kind: input, shape index: {}]   ;;  %s740_s7 = inlined_call_operand.hbm [shape: f32[8,128], index: 7, kind: output, shape index: {}]  }
   0x1   :  { %13 = vsyncpa [#allocation7], 0 }
   0x2   :  { %14 = vsyncpa [#allocation10], 0 }
   0x3   :  { %15 = vsyncpa [#allocation13], 0 }
   0x4   :  { %16 = vsyncpa [#allocation5], 0  ;;  %s579_s24 = smov [#allocation6]   ;;  %s393_s28 = scalar_lea.hbm %s734_s1, 2048 }
   0x5   :  { %s32_s25 = sshll.u32 %s579_s24, 4  ;;  %p394_p0 = scmp.ne.s32.totalorder %s734_s1, %s393_s28  ;;  %s33_s25 = int_to_ptr.vmem [resolvable:$true] %s32_s25 }
   0x6   :  { %p397_p1 = scmp.lt.u32.totalorder %s393_s28, %s734_s1 }
   0x8   :  { %p399_p2 = pnand %p397_p1, %p394_p0 }
   0xa   :  { %402 = shalt.err (!%p399_p2)
}
   0xb   :  { %s403_s10 = scalar_lea.vmem %s33_s25, 2048  ;;  %p408_p4 = scmp.lt.s32.totalorder %s33_s25, %s33_s25 }
   0xc   :  { %p404_p3 = scmp.ne.s32.totalorder %s33_s25, %s403_s10  ;;  %p409_p5 = scmp.lt.s32.totalorder %s403_s10, %s403_s10 }
   0xe   :  { %p410_p6 = por %p409_p5, %p408_p4 }
  0x10   :  { %p411_p7 = pnand %p410_p6, %p404_p3 }
  0x12   :  { %414 = shalt.err (!%p411_p7)
}
  0x13   :  { %s580_s11 = smov 256   ;;  %s581_s12 = smov 16  }
  0x14   :  { %38 = dma.hbm_to_vmem [thread:$0]  %s734_s1, 2048, %s33_s25, [#allocation7], %s580_s11, %s580_s11, %s581_s12  }
  0x15   :  { %s582_s15 = smov [#allocation9]   ;;  %s583_s17 = smov [#allocation12]  }
  0x16   :  { %s55_s16 = sshll.u32 %s582_s15, 4  ;;  %s77_s18 = sshll.u32 %s583_s17, 4  ;;  %s56_s16 = int_to_ptr.vmem [resolvable:$true] %s55_s16  ;;  %s78_s18 = int_to_ptr.vmem [resolvable:$true] %s77_s18 }
  0x17   :  { %s415_s21 = scalar_lea.hbm %s736_s3, 32 }
  0x18   :  { %p416_p8 = scmp.ne.s32.totalorder %s736_s3, %s415_s21  ;;  %p419_p9 = scmp.lt.u32.totalorder %s415_s21, %s736_s3 }
  0x1a   :  { %p421_p10 = pnand %p419_p9, %p416_p8 }
  0x1c   :  { %424 = shalt.err (!%p421_p10)
}
  0x1d   :  { %s425_s1 = scalar_lea.vmem %s56_s16, 32  ;;  %p430_p12 = scmp.lt.s32.totalorder %s56_s16, %s56_s16 }
  0x1e   :  { %p426_p11 = scmp.ne.s32.totalorder %s56_s16, %s425_s1  ;;  %p431_p13 = scmp.lt.s32.totalorder %s425_s1, %s425_s1 }
  0x20   :  { %p432_p0 = por %p431_p13, %p430_p12 }
  0x22   :  { %p433_p1 = pnand %p432_p0, %p426_p11 }
  0x24   :  { %436 = shalt.err (!%p433_p1)
}
  0x25   :  { %58 = dma.hbm_to_vmem [thread:$0]  %s736_s3, 32, %s56_s16, [#allocation10]  }
  0x26   :  { %s437_s30 = scalar_lea.hbm %s738_s5, 16 }
  0x27   :  { %p438_p2 = scmp.ne.s32.totalorder %s738_s5, %s437_s30  ;;  %p441_p3 = scmp.lt.u32.totalorder %s437_s30, %s738_s5 }
  0x29   :  { %p443_p4 = pnand %p441_p3, %p438_p2 }
  0x2b   :  { %446 = shalt.err (!%p443_p4)
}
  0x2c   :  { %s447_s12 = scalar_lea.vmem %s78_s18, 16  ;;  %s451_s13 = scalar_lea.vmem %s78_s18, 32 }
  0x2d   :  { %p448_p5 = scmp.ne.s32.totalorder %s78_s18, %s447_s12  ;;  %p452_p6 = scmp.lt.s32.totalorder %s78_s18, %s78_s18 }
  0x2e   :  { %p453_p7 = scmp.lt.s32.totalorder %s451_s13, %s447_s12 }
  0x30   :  { %p454_p8 = por %p453_p7, %p452_p6 }
  0x32   :  { %p455_p9 = pnand %p454_p8, %p448_p5 }
  0x34   :  { %458 = shalt.err (!%p455_p9)
}
  0x35   :  { %80 = dma.hbm_to_vmem [thread:$0]  %s738_s5, 16, %s78_s18, [#allocation13]  }
  0x36   :  { %s584_s15 = smov [#allocation3]   ;;  %s585_s17 = smov [#allocation8]  }
  0x37   :  { %s23_s16 = sshll.u32 %s584_s15, 4  ;;  %s45_s19 = sshll.u32 %s585_s17, 4  ;;  %s24_s16 = int_to_ptr.vmem [resolvable:$true] %s23_s16  ;;  %s46_s19 = int_to_ptr.vmem [resolvable:$true] %s45_s19 }
  0x38   :  { %s459_s22 = scalar_lea.hbm %s733_s0, 128 }
  0x39   :  { %p460_p10 = scmp.ne.s32.totalorder %s733_s0, %s459_s22  ;;  %p463_p11 = scmp.lt.u32.totalorder %s459_s22, %s733_s0 }
  0x3b   :  { %p465_p12 = pnand %p463_p11, %p460_p10 }
  0x3d   :  { %468 = shalt.err (!%p465_p12)
}
  0x3e   :  { %s469_s5 = scalar_lea.vmem %s24_s16, 128  ;;  %p474_p0 = scmp.lt.s32.totalorder %s24_s16, %s24_s16 }
  0x3f   :  { %p470_p13 = scmp.ne.s32.totalorder %s24_s16, %s469_s5  ;;  %p475_p1 = scmp.lt.s32.totalorder %s469_s5, %s469_s5 }
  0x41   :  { %p476_p2 = por %p475_p1, %p474_p0 }
  0x43   :  { %p477_p3 = pnand %p476_p2, %p470_p13 }
  0x45   :  { %480 = shalt.err (!%p477_p3)
}
  0x46   :  { %26 = dma.hbm_to_vmem [thread:$0]  %s733_s0, 128, %s24_s16, [#allocation4]  }
  0x47   :  { %s481_s29 = scalar_lea.hbm %s735_s2, 32 }
  0x48   :  { %p482_p4 = scmp.ne.s32.totalorder %s735_s2, %s481_s29  ;;  %p485_p5 = scmp.lt.u32.totalorder %s481_s29, %s735_s2 }
  0x4a   :  { %p487_p6 = pnand %p485_p5, %p482_p4 }
  0x4c   :  { %490 = shalt.err (!%p487_p6)
}
  0x4d   :  { %s491_s11 = scalar_lea.vmem %s46_s19, 32  ;;  %p496_p8 = scmp.lt.s32.totalorder %s46_s19, %s46_s19 }
  0x4e   :  { %p492_p7 = scmp.ne.s32.totalorder %s46_s19, %s491_s11  ;;  %p497_p9 = scmp.lt.s32.totalorder %s491_s11, %s491_s11 }
  0x50   :  { %p498_p10 = por %p497_p9, %p496_p8 }
  0x52   :  { %p499_p11 = pnand %p498_p10, %p492_p7 }
  0x54   :  { %502 = shalt.err (!%p499_p11)
}
  0x55   :  { %48 = dma.hbm_to_vmem [thread:$0]  %s735_s2, 32, %s46_s19, [#allocation7]  }
  0x56   :  { %s586_s13 = smov [#allocation11]   ;;  %s503_s16 = scalar_lea.hbm %s737_s4, 1024 }
  0x57   :  { %s64_s3 = sshll.u32 %s586_s13, 4  ;;  %p504_p12 = scmp.ne.s32.totalorder %s737_s4, %s503_s16  ;;  %s65_s3 = int_to_ptr.vmem [resolvable:$true] %s64_s3 }
  0x58   :  { %p507_p13 = scmp.lt.u32.totalorder %s503_s16, %s737_s4 }
  0x5a   :  { %p509_p0 = pnand %p507_p13, %p504_p12 }
  0x5c   :  { %512 = shalt.err (!%p509_p0)
}
  0x5d   :  { %s513_s23 = scalar_lea.vmem %s65_s3, 1024  ;;  %p518_p2 = scmp.lt.s32.totalorder %s65_s3, %s65_s3 }
  0x5e   :  { %p514_p1 = scmp.ne.s32.totalorder %s65_s3, %s513_s23  ;;  %p519_p3 = scmp.lt.s32.totalorder %s513_s23, %s513_s23 }
  0x60   :  { %p520_p4 = por %p519_p3, %p518_p2 }
  0x62   :  { %p521_p5 = pnand %p520_p4, %p514_p1 }
  0x64   :  { %524 = shalt.err (!%p521_p5)
}
  0x65   :  { %s587_s2 = smov 128   ;;  %s588_s19 = smov 8  }
  0x66   :  { %70 = dma.hbm_to_vmem [thread:$0]  %s737_s4, 1024, %s65_s3, [#allocation10], %s587_s2, %s587_s2, %s588_s19  }
  0x67   :  { %s589_s1 = smov [#allocation14]   ;;  %s525_s27 = scalar_lea.hbm %s739_s6, 16 }
  0x68   :  { %s87_s5 = sshll.u32 %s589_s1, 4  ;;  %p526_p6 = scmp.ne.s32.totalorder %s739_s6, %s525_s27  ;;  %s88_s5 = int_to_ptr.vmem [resolvable:$true] %s87_s5 }
  0x69   :  { %p529_p7 = scmp.lt.u32.totalorder %s525_s27, %s739_s6 }
  0x6b   :  { %p531_p8 = pnand %p529_p7, %p526_p6 }
  0x6d   :  { %534 = shalt.err (!%p531_p8)
}
  0x6e   :  { %s535_s9 = scalar_lea.vmem %s88_s5, 16  ;;  %s539_s4 = scalar_lea.vmem %s88_s5, 32 }
  0x6f   :  { %p536_p9 = scmp.ne.s32.totalorder %s88_s5, %s535_s9  ;;  %p540_p10 = scmp.lt.s32.totalorder %s88_s5, %s88_s5 }
  0x70   :  { %p541_p11 = scmp.lt.s32.totalorder %s539_s4, %s535_s9 }
  0x72   :  { %p542_p12 = por %p541_p11, %p540_p10 }
  0x74   :  { %p543_p13 = pnand %p542_p12, %p536_p9 }
  0x76   :  { %546 = shalt.err (!%p543_p13)
}
  0x77   :  { %90 = dma.hbm_to_vmem [thread:$0]  %s739_s6, 16, %s88_s5, [#allocation13]  }
  0x78   :  { %569 = dma.done.wait [#allocation4], 128  }
  0x79   :  { %570 = vsyncadd [#allocation4], 4294967168 }
  0x7a   :  { %571 = dma.done.wait [#allocation7], 2080  }
  0x7b   :  { %572 = vsyncadd [#allocation7], 4294965216 }
  0x7c   :  { %573 = dma.done.wait [#allocation10], 1056  }
  0x7d   :  { %574 = vsyncadd [#allocation10], 4294966240 }
  0x7e   :  { %575 = dma.done.wait [#allocation13], 32  }
  0x7f   :  { %576 = vsyncadd [#allocation13], 4294967264  ;;  %v119_v0 = vld [vmem:[#allocation6 + $0x8] sm:$0xff]  ;;  %v118_v1 = vld [vmem:[#allocation6] sm:$0xff]  ;;  %s590_s6 = smov [#allocation15]  }
  0x80   :  { %v135_v2 = vunpack.c.l.s8.bf16 %v119_v0  ;;  %v137_v3 = vunpack.c.h.s8.bf16 %v119_v0  ;;  %v134_v4 = vunpack.c.l.s8.bf16 %v118_v1  ;;  %v121_v5 = vld [vmem:[#allocation6 + $0x18] sm:$0xff]  ;;  %v136_v6 = vunpack.c.h.s8.bf16 %v118_v1  ;;  %v120_v8 = vld [vmem:[#allocation6 + $0x10] sm:$0xff]  ;;  %v249_v10 = vld [vmem:[#allocation11 + $0x20] sm:$0xff]  ;;  %s341_s0 = sshll.u32 %s590_s6, 4  ;;  %s342_s0 = int_to_ptr.vmem [resolvable:$true] %s341_s0 }
  0x81   :  { %v139_v7 = vunpack.c.l.s8.bf16 %v121_v5  ;;  %v715_v9 = vld [vmem:[#allocation3] sm:$0xff]  ;;  %v245_v11 = vld [vmem:[#allocation11] sm:$0xff]  ;;  %v138_v12 = vunpack.c.l.s8.bf16 %v120_v8  ;;  %v141_v13 = vunpack.c.h.s8.bf16 %v121_v5  ;;  %v261_v15 = vunpack.c.l.s8.bf16 %v249_v10  ;;  %v250_v19 = vld [vmem:[#allocation11 + $0x28] sm:$0xff]  ;;  %s547_s12 = scalar_lea.vmem %s342_s0, 128  ;;  %p552_p1 = scmp.lt.s32.totalorder %s342_s0, %s342_s0 }
  0x82   :  { %174 = vmatprep.subr.bf16.mxu0 %v135_v2  ;;  %v354_v14 = vcombine.high %v715_v9, %v715_v9  ;;  %v262_v16 = vunpack.c.h.s8.bf16 %v249_v10  ;;  %v123_v17 = vld [vmem:[#allocation6 + $0x28] sm:$0xff]  ;;  %v253_v18 = vunpack.c.l.s8.bf16 %v245_v11  ;;  %v140_v20 = vunpack.c.h.s8.bf16 %v120_v8  ;;  %v122_v23 = vld [vmem:[#allocation6 + $0x20] sm:$0xff]  ;;  %v125_v30 = vld [vmem:[#allocation6 + $0x38] sm:$0xff]  ;;  %p548_p0 = scmp.ne.s32.totalorder %s342_s0, %s547_s12  ;;  %p553_p2 = scmp.lt.s32.totalorder %s547_s12, %s547_s12 }
  0x83   :  { %175 = vmatpush1.bf16.msra.mxu0 %v134_v4  ;;  %357 = vmatprep.subr.bf16.mxu1 %v261_v15  ;;  %v254_v21 = vunpack.c.h.s8.bf16 %v245_v11  ;;  %v143_v22 = vunpack.c.l.s8.bf16 %v123_v17  ;;  %v263_v24 = vunpack.c.l.s8.bf16 %v250_v19  ;;  %v246_v25 = vld [vmem:[#allocation11 + $0x8] sm:$0xff]  ;;  %v142_v26 = vunpack.c.l.s8.bf16 %v122_v23  ;;  %v251_v31 = vld [vmem:[#allocation11 + $0x30] sm:$0xff]  ;;  %v126_v45 = vld [vmem:[#allocation6 + $0x40] sm:$0xff] }
  0x84   :  { %176 = vmatprep.subr.bf16.mxu0 %v137_v3  ;;  %206 = vmatprep.mubr.bf16.mxu0 %v354_v14  ;;  %v255_v27 = vunpack.c.l.s8.bf16 %v246_v25  ;;  %v145_v28 = vunpack.c.h.s8.bf16 %v123_v17  ;;  %v264_v29 = vunpack.c.h.s8.bf16 %v250_v19  ;;  %v144_v32 = vunpack.c.h.s8.bf16 %v122_v23  ;;  %v124_v35 = vld [vmem:[#allocation6 + $0x30] sm:$0xff]  ;;  %v127_v42 = vld [vmem:[#allocation6 + $0x48] sm:$0xff]  ;;  %v129_v48 = vld [vmem:[#allocation6 + $0x58] sm:$0xff]  ;;  %p554_p3 = por %p553_p2, %p552_p1 }
  0x85   :  { %358 = vmatpush3.bf16.msra.mxu1 %v253_v18  ;;  %v256_v33 = vunpack.c.h.s8.bf16 %v246_v25  ;;  %v147_v34 = vunpack.c.l.s8.bf16 %v125_v30  ;;  %v265_v36 = vunpack.c.l.s8.bf16 %v251_v31  ;;  %v247_v37 = vld [vmem:[#allocation11 + $0x10] sm:$0xff]  ;;  %v146_v38 = vunpack.c.l.s8.bf16 %v124_v35  ;;  %v131_v54 = vld [vmem:[#allocation6 + $0x68] sm:$0xff]  ;;  %v130_v57 = vld [vmem:[#allocation6 + $0x60] sm:$0xff] }
  0x86   :  { %359 = vmatprep.subr.bf16.mxu1 %v262_v16  ;;  %v257_v39 = vunpack.c.l.s8.bf16 %v247_v37  ;;  %v149_v40 = vunpack.c.h.s8.bf16 %v125_v30  ;;  %v266_v41 = vunpack.c.h.s8.bf16 %v251_v31  ;;  %v148_v43 = vunpack.c.h.s8.bf16 %v124_v35  ;;  %v128_v51 = vld [vmem:[#allocation6 + $0x50] sm:$0xff]  ;;  %v133_v60 = vld [vmem:[#allocation6 + $0x78] sm:$0xff]  ;;  %v215_v15 = vld [vmem:[#allocation8] sm:$0x3]  ;;  %p555_p4 = pnand %p554_p3, %p548_p0 }
  0x87   :  { %177 = vmatpush1.bf16.msra.mxu0 %v136_v6  ;;  %v151_v44 = vunpack.c.l.s8.bf16 %v127_v42  ;;  %v150_v46 = vunpack.c.l.s8.bf16 %v126_v45  ;;  %v153_v47 = vunpack.c.h.s8.bf16 %v127_v42  ;;  %v152_v49 = vunpack.c.h.s8.bf16 %v126_v45  ;;  %v132_v63 = vld [vmem:[#allocation6 + $0x70] sm:$0xff]  ;;  %v252_v5 = vld [vmem:[#allocation11 + $0x38] sm:$0xff]  ;;  %v355_v35 = vld [vmem:[#allocation12] ss:$0 sm:$0xff] }
  0x88   :  { %178 = vmatprep.subr.bf16.mxu0 %v139_v7  ;;  %v155_v50 = vunpack.c.l.s8.bf16 %v129_v48  ;;  %v154_v52 = vunpack.c.l.s8.bf16 %v128_v51  ;;  %v157_v53 = vunpack.c.h.s8.bf16 %v129_v48  ;;  %v156_v55 = vunpack.c.h.s8.bf16 %v128_v51  ;;  %v248_v7 = vld [vmem:[#allocation11 + $0x18] sm:$0xff] }
  0x89   :  { %360 = vmatpush3.bf16.msra.mxu1 %v254_v21  ;;  %v159_v56 = vunpack.c.l.s8.bf16 %v131_v54  ;;  %v158_v58 = vunpack.c.l.s8.bf16 %v130_v57  ;;  %v161_v59 = vunpack.c.h.s8.bf16 %v131_v54  ;;  %v160_v61 = vunpack.c.h.s8.bf16 %v130_v57 }
  0x8a   :  { %361 = vmatprep.subr.bf16.mxu1 %v263_v24  ;;  %v163_v62 = vunpack.c.l.s8.bf16 %v133_v60  ;;  %v162_v0 = vunpack.c.l.s8.bf16 %v132_v63  ;;  %v165_v1 = vunpack.c.h.s8.bf16 %v133_v60  ;;  %v164_v2 = vunpack.c.h.s8.bf16 %v132_v63 }
  0x8b   :  { %179 = vmatpush1.bf16.msra.mxu0 %v138_v12  ;;  %v353_v3 = vcombine.low %v715_v9, %v715_v9  ;;  %v258_v4 = vunpack.c.h.s8.bf16 %v247_v37  ;;  %v267_v6 = vunpack.c.l.s8.bf16 %v252_v5  ;;  %v259_v8 = vunpack.c.l.s8.bf16 %v248_v7  ;;  %v229_v9 = vld [vmem:[#allocation9] sm:$0x3] }
  0x8c   :  { %180 = vmatprep.subr.bf16.mxu0 %v141_v13  ;;  %v268_v10 = vunpack.c.h.s8.bf16 %v252_v5  ;;  %v260_v11 = vunpack.c.h.s8.bf16 %v248_v7  ;;  %v217_v12 = vlaneseq }
  0x8d   :  { %362 = vmatpush3.bf16.msra.mxu1 %v255_v27 }
  0x8e   :  { %363 = vmatprep.subr.bf16.mxu1 %v264_v29  ;;  %v218_v13 = vshrl.u32 %v217_v12, 7 }
  0x8f   :  { %181 = vmatpush1.bf16.msra.mxu0 %v140_v20 }
  0x90   :  { %182 = vmatprep.subr.bf16.mxu0 %v143_v22  ;;  %v219_v14 = vsub.s32 0, %v218_v13  ;;  %v223_v16 = vsub.s32 1, %v218_v13 }
  0x91   :  { %364 = vmatpush3.bf16.msra.mxu1 %v256_v33 }
  0x92   :  { %365 = vmatprep.subr.bf16.mxu1 %v265_v36  ;;  %v220_v17 = vrot.slane %v215_v15, %v219_v14  ;;  %v224_v18 = vrot.slane %v215_v15, %v223_v16  ;;  %v234_v19 = vrot.slane %v229_v9, %v219_v14  ;;  %v238_v21 = vrot.slane %v229_v9, %v223_v16 }
  0x93   :  { %183 = vmatpush1.bf16.msra.mxu0 %v142_v26 }
  0x94   :  { %184 = vmatprep.subr.bf16.mxu0 %v145_v28 }
  0x95   :  { %366 = vmatpush3.bf16.msra.mxu1 %v257_v39  ;;  %v356_v39 = vld [vmem:[#allocation14] ss:$0 sm:$0xff] }
  0x96   :  { %367 = vmatprep.subr.bf16.mxu1 %v266_v41 }
  0x97   :  { %185 = vmatpush1.bf16.msra.mxu0 %v144_v32 }
  0x98   :  { %186 = vmatprep.subr.bf16.mxu0 %v147_v34 }
  0x99   :  { %368 = vmatpush3.bf16.msra.mxu1 %v258_v4 }
  0x9a   :  { %369 = vmatprep.subr.bf16.mxu1 %v267_v6 }
  0x9b   :  { %187 = vmatpush1.bf16.msra.mxu0 %v146_v38 }
  0x9c   :  { %188 = vmatprep.subr.bf16.mxu0 %v149_v40 }
  0x9d   :  { %370 = vmatpush3.bf16.msra.mxu1 %v259_v8 }
  0x9e   :  { %371 = vmatprep.subr.bf16.mxu1 %v268_v10 }
  0x9f   :  { %189 = vmatpush1.bf16.msra.mxu0 %v148_v43 }
  0xa0   :  { %190 = vmatprep.subr.bf16.mxu0 %v151_v44 }
  0xa1   :  { %372 = vmatpush3.bf16.msra.mxu1 %v260_v11 }
  0xa3   :  { %191 = vmatpush1.bf16.msra.mxu0 %v150_v46 }
  0xa4   :  { %192 = vmatprep.subr.bf16.mxu0 %v153_v47 }
  0xa7   :  { %193 = vmatpush1.bf16.msra.mxu0 %v152_v49 }
  0xa8   :  { %194 = vmatprep.subr.bf16.mxu0 %v155_v50 }
  0xab   :  { %195 = vmatpush1.bf16.msra.mxu0 %v154_v52 }
  0xac   :  { %196 = vmatprep.subr.bf16.mxu0 %v157_v53 }
  0xaf   :  { %197 = vmatpush1.bf16.msra.mxu0 %v156_v55 }
  0xb0   :  { %198 = vmatprep.subr.bf16.mxu0 %v159_v56 }
  0xb3   :  { %199 = vmatpush1.bf16.msra.mxu0 %v158_v58 }
  0xb4   :  { %200 = vmatprep.subr.bf16.mxu0 %v161_v59 }
  0xb7   :  { %201 = vmatpush1.bf16.msra.mxu0 %v160_v61 }
  0xb8   :  { %202 = vmatprep.subr.bf16.mxu0 %v163_v62 }
  0xbb   :  { %203 = vmatpush1.bf16.msra.mxu0 %v162_v0 }
  0xbc   :  { %204 = vmatprep.subr.bf16.mxu0 %v165_v1 }
  0xbf   :  { %205 = vmatpush1.bf16.msra.mxu0 %v164_v2 }
  0xc2   :  { %207 = vmatmul.mubr.bf16.vlgmr.msra.gmra.mrb[0].mxu0 %v353_v3 }
 0x195   :  { %v208_v20 = vpop.f32.mrb[0].mxu0 }
 0x196   :  { %v227_v22 = vmul.f32 %v220_v17, %v208_v20  ;;  %v210_v23 = vpop.f32.mrb[1].mxu0 }
 0x197   :  { %v228_v24 = vmul.f32 %v224_v18, %v210_v23  ;;  %v212_v25 = vpop.f32.mrb[2].mxu0 }
 0x198   :  { %v241_v26 = vadd.f32 %v234_v19, %v227_v22  ;;  %v213_v27 = vpop.f32.mrb[3].mxu0 }
 0x199   :  { %v242_v28 = vadd.f32 %v238_v21, %v228_v24 }
 0x19a   :  { %v243_v29 = vmax.f32 %v241_v26, 0.0 }
 0x19b   :  { %v244_v30 = vmax.f32 %v242_v28, 0.0 }
 0x19c   :  { %v270_v32 = vpack.c.bf16 %v243_v29, %v243_v29 }
 0x19d   :  { %v271_v31 = vpack.c.bf16 %v244_v30, %v244_v30 }
 0x19f   :  { %304 = vmatprep.mubr.bf16.mxu1 %v271_v31 }
 0x1a0   :  { %305 = vmatmul.mubr.bf16.vlgmr.msra.gmra.mrb[0].mxu1 %v270_v32 }
 0x273   :  { %v373_v33 = vpop.f32.mrb[0].mxu1 }
 0x274   :  { %v374_v34 = vpop.f32.mrb[1].mxu1 }
 0x275   :  { %v375_v36 = vadd.f32 %v374_v34, %v373_v33  ;;  %v376_v37 = vpop.f32.mrb[2].mxu1 }
 0x276   :  { %v377_v38 = vpop.f32.mrb[3].mxu1 }
 0x277   :  { %v325_v40 = vmul.f32 %v375_v36, %v355_v35 }
 0x279   :  { %v333_v41 = vadd.f32 %v356_v39, %v325_v40 }
 0x27b   :  { %334 = vst [vmem:[#allocation15] sm:$0xff] %v333_v41 }
 0x27c   :  { %558 = shalt.err (!%p555_p4)
}
 0x27d   :  { %s559_s14 = scalar_lea.hbm %s740_s7, 128 }
 0x27e   :  { %p560_p5 = scmp.ne.s32.totalorder %s740_s7, %s559_s14  ;;  %p563_p6 = scmp.lt.u32.totalorder %s559_s14, %s740_s7 }
 0x280   :  { %p565_p7 = pnand %p563_p6, %p560_p5 }
 0x282   :  { %568 = shalt.err (!%p565_p7)
}
 0x283   :  { %344 = dma.vmem_to_hbm [thread:$0]  %s342_s0, 128, %s740_s7, [#allocation5]  }
 0x284   :  { %577 = dma.done.wait [#allocation5], 128  }
 0x285   :  { %578 = vsyncadd [#allocation5], 4294967168 }
 0x286   :  { %348 = vsyncpa [#allocation4], 1 }
 0x287   :  { %349 = vsyncpa [#allocation7], 1 }
 0x288   :  { %350 = vsyncpa [#allocation10], 1 }
 0x289   :  { %351 = vsyncpa [#allocation13], 1 }
 0x28a   :  { %352 = vsyncpa [#allocation5], 1 }

// kernel: model_forward.2
= control target key start
LH: loop header
LB: loop body
LE: loop exit
PB: predicated region body
PF: predicated region fallthrough
CT: control target
= control target key end

     0   :  { %9 = vsyncpa [#allocation3], 0  ;;  %s558_s0 = inlined_call_operand.hbm [shape: bf16[8,512], index: 0, kind: input, shape index: {}]   ;;  %s559_s1 = inlined_call_operand.hbm [shape: s8[1,512,256], index: 1, kind: input, shape index: {}]   ;;  %s560_s2 = inlined_call_operand.hbm [shape: f32[1,256], index: 2, kind: input, shape index: {}]   ;;  %s561_s3 = inlined_call_operand.hbm [shape: f32[1,256], index: 3, kind: input, shape index: {}]   ;;  %s562_s4 = inlined_call_operand.hbm [shape: bf16[8,256], index: 4, kind: output, shape index: {}]  }
   0x1   :  { %10 = vsyncpa [#allocation6], 0 }
   0x2   :  { %11 = vsyncpa [#allocation9], 0 }
   0x3   :  { %12 = vsyncpa [#allocation4], 0  ;;  %s454_s15 = smov [#allocation5]   ;;  %s336_s19 = scalar_lea.hbm %s559_s1, 4096 }
   0x4   :  { %s28_s16 = sshll.u32 %s454_s15, 4  ;;  %p337_p0 = scmp.ne.s32.totalorder %s559_s1, %s336_s19  ;;  %s29_s16 = int_to_ptr.vmem [resolvable:$true] %s28_s16 }
   0x5   :  { %p340_p1 = scmp.lt.u32.totalorder %s336_s19, %s559_s1 }
   0x7   :  { %p342_p2 = pnand %p340_p1, %p337_p0 }
   0x9   :  { %345 = shalt.err (!%p342_p2)
}
   0xa   :  { %s346_s24 = scalar_lea.vmem %s29_s16, 4096  ;;  %p351_p4 = scmp.lt.s32.totalorder %s29_s16, %s29_s16 }
   0xb   :  { %p347_p3 = scmp.ne.s32.totalorder %s29_s16, %s346_s24  ;;  %p352_p5 = scmp.lt.s32.totalorder %s346_s24, %s346_s24 }
   0xd   :  { %p353_p6 = por %p352_p5, %p351_p4 }
   0xf   :  { %p354_p7 = pnand %p353_p6, %p347_p3 }
  0x11   :  { %357 = shalt.err (!%p354_p7)
}
  0x12   :  { %s455_s25 = smov 256   ;;  %s456_s26 = smov 16  }
  0x13   :  { %34 = dma.hbm_to_vmem [thread:$0]  %s559_s1, 4096, %s29_s16, [#allocation6], %s455_s25, %s455_s25, %s456_s26  }
  0x14   :  { %s457_s29 = smov [#allocation2]   ;;  %s458_s5 = smov [#allocation7]  }
  0x15   :  { %s19_s30 = sshll.u32 %s457_s29, 4  ;;  %s41_s6 = sshll.u32 %s458_s5, 4  ;;  %s20_s30 = int_to_ptr.vmem [resolvable:$true] %s19_s30  ;;  %s42_s6 = int_to_ptr.vmem [resolvable:$true] %s41_s6 }
  0x16   :  { %s358_s9 = scalar_lea.hbm %s558_s0, 256 }
  0x17   :  { %p359_p8 = scmp.ne.s32.totalorder %s558_s0, %s358_s9  ;;  %p362_p9 = scmp.lt.u32.totalorder %s358_s9, %s558_s0 }
  0x19   :  { %p364_p10 = pnand %p362_p9, %p359_p8 }
  0x1b   :  { %367 = shalt.err (!%p364_p10)
}
  0x1c   :  { %s368_s1 = scalar_lea.vmem %s20_s30, 256  ;;  %p373_p12 = scmp.lt.s32.totalorder %s20_s30, %s20_s30 }
  0x1d   :  { %p369_p11 = scmp.ne.s32.totalorder %s20_s30, %s368_s1  ;;  %p374_p13 = scmp.lt.s32.totalorder %s368_s1, %s368_s1 }
  0x1f   :  { %p375_p0 = por %p374_p13, %p373_p12 }
  0x21   :  { %p376_p1 = pnand %p375_p0, %p369_p11 }
  0x23   :  { %379 = shalt.err (!%p376_p1)
}
  0x24   :  { %22 = dma.hbm_to_vmem [thread:$0]  %s558_s0, 256, %s20_s30, [#allocation3]  }
  0x25   :  { %s380_s18 = scalar_lea.hbm %s560_s2, 32 }
  0x26   :  { %p381_p2 = scmp.ne.s32.totalorder %s560_s2, %s380_s18  ;;  %p384_p3 = scmp.lt.u32.totalorder %s380_s18, %s560_s2 }
  0x28   :  { %p386_p4 = pnand %p384_p3, %p381_p2 }
  0x2a   :  { %389 = shalt.err (!%p386_p4)
}
  0x2b   :  { %s390_s23 = scalar_lea.vmem %s42_s6, 32  ;;  %p395_p6 = scmp.lt.s32.totalorder %s42_s6, %s42_s6 }
  0x2c   :  { %p391_p5 = scmp.ne.s32.totalorder %s42_s6, %s390_s23  ;;  %p396_p7 = scmp.lt.s32.totalorder %s390_s23, %s390_s23 }
  0x2e   :  { %p397_p8 = por %p396_p7, %p395_p6 }
  0x30   :  { %p398_p9 = pnand %p397_p8, %p391_p5 }
  0x32   :  { %401 = shalt.err (!%p398_p9)
}
  0x33   :  { %44 = dma.hbm_to_vmem [thread:$0]  %s560_s2, 32, %s42_s6, [#allocation6]  }
  0x34   :  { %s459_s25 = smov [#allocation8]   ;;  %s402_s29 = scalar_lea.hbm %s561_s3, 32 }
  0x35   :  { %s51_s26 = sshll.u32 %s459_s25, 4  ;;  %p403_p10 = scmp.ne.s32.totalorder %s561_s3, %s402_s29  ;;  %s52_s26 = int_to_ptr.vmem [resolvable:$true] %s51_s26 }
  0x36   :  { %p406_p11 = scmp.lt.u32.totalorder %s402_s29, %s561_s3 }
  0x38   :  { %p408_p12 = pnand %p406_p11, %p403_p10 }
  0x3a   :  { %411 = shalt.err (!%p408_p12)
}
  0x3b   :  { %s412_s9 = scalar_lea.vmem %s52_s26, 32  ;;  %p417_p0 = scmp.lt.s32.totalorder %s52_s26, %s52_s26 }
  0x3c   :  { %p413_p13 = scmp.ne.s32.totalorder %s52_s26, %s412_s9  ;;  %p418_p1 = scmp.lt.s32.totalorder %s412_s9, %s412_s9 }
  0x3e   :  { %p419_p2 = por %p418_p1, %p417_p0 }
  0x40   :  { %p420_p3 = pnand %p419_p2, %p413_p13 }
  0x42   :  { %423 = shalt.err (!%p420_p3)
}
  0x43   :  { %54 = dma.hbm_to_vmem [thread:$0]  %s561_s3, 32, %s52_s26, [#allocation9]  }
  0x44   :  { %446 = dma.done.wait [#allocation3], 256  }
  0x45   :  { %447 = vsyncadd [#allocation3], 4294967040 }
  0x46   :  { %448 = dma.done.wait [#allocation6], 4128  }
  0x47   :  { %449 = vsyncadd [#allocation6], 4294963168 }
  0x48   :  { %450 = dma.done.wait [#allocation9], 32  }
  0x49   :  { %451 = vsyncadd [#allocation9], 4294967264  ;;  %v68_v0 = vld [vmem:[#allocation5 + $0x8] sm:$0xff]  ;;  %v67_v2 = vld [vmem:[#allocation5] sm:$0xff]  ;;  %s460_s3 = smov [#allocation10]  }
  0x4a   :  { %v84_v1 = vld [vmem:[#allocation5 + $0x88] sm:$0xff]  ;;  %v100_v3 = vunpack.c.l.s8.bf16 %v68_v0  ;;  %v102_v4 = vunpack.c.h.s8.bf16 %v68_v0  ;;  %v83_v7 = vld [vmem:[#allocation5 + $0x80] sm:$0xff]  ;;  %v99_v8 = vunpack.c.l.s8.bf16 %v67_v2  ;;  %v70_v10 = vld [vmem:[#allocation5 + $0x18] sm:$0xff]  ;;  %v101_v12 = vunpack.c.h.s8.bf16 %v67_v2  ;;  %s306_s10 = sshll.u32 %s460_s3, 4  ;;  %s307_s10 = int_to_ptr.vmem [resolvable:$true] %s306_s10 }
  0x4b   :  { %v132_v5 = vunpack.c.l.s8.bf16 %v84_v1  ;;  %v134_v6 = vunpack.c.h.s8.bf16 %v84_v1  ;;  %v131_v9 = vunpack.c.l.s8.bf16 %v83_v7  ;;  %v86_v11 = vld [vmem:[#allocation5 + $0x98] sm:$0xff]  ;;  %v133_v13 = vunpack.c.h.s8.bf16 %v83_v7  ;;  %v69_v16 = vld [vmem:[#allocation5 + $0x10] sm:$0xff]  ;;  %v72_v22 = vld [vmem:[#allocation5 + $0x28] sm:$0xff]  ;;  %s424_s11 = scalar_lea.vmem %s307_s10, 128  ;;  %p429_p5 = scmp.lt.s32.totalorder %s307_s10, %s307_s10 }
  0x4c   :  { %179 = vmatprep.subr.bf16.mxu1 %v100_v3  ;;  %v104_v14 = vunpack.c.l.s8.bf16 %v70_v10  ;;  %v136_v15 = vunpack.c.l.s8.bf16 %v86_v11  ;;  %v85_v17 = vld [vmem:[#allocation5 + $0x90] sm:$0xff]  ;;  %v103_v18 = vunpack.c.l.s8.bf16 %v69_v16  ;;  %v106_v20 = vunpack.c.h.s8.bf16 %v70_v10  ;;  %v88_v23 = vld [vmem:[#allocation5 + $0xa8] sm:$0xff]  ;;  %v71_v28 = vld [vmem:[#allocation5 + $0x20] sm:$0xff]  ;;  %p425_p4 = scmp.ne.s32.totalorder %s307_s10, %s424_s11  ;;  %p430_p6 = scmp.lt.s32.totalorder %s424_s11, %s424_s11 }
  0x4d   :  { %220 = vmatprep.subr.bf16.mxu0 %v132_v5  ;;  %180 = vmatpush1.bf16.msra.mxu1 %v99_v8  ;;  %v135_v19 = vunpack.c.l.s8.bf16 %v85_v17  ;;  %v138_v21 = vunpack.c.h.s8.bf16 %v86_v11  ;;  %v105_v24 = vunpack.c.h.s8.bf16 %v69_v16  ;;  %v137_v25 = vunpack.c.h.s8.bf16 %v85_v17  ;;  %v87_v29 = vld [vmem:[#allocation5 + $0xa0] sm:$0xff]  ;;  %v534_v30 = vld [vmem:[#allocation2] sm:$0xff]  ;;  %v536_v31 = vld [vmem:[#allocation2 + $0x8] sm:$0xff] }
  0x4e   :  { %221 = vmatpush1.bf16.msra.mxu0 %v131_v9  ;;  %181 = vmatprep.subr.bf16.mxu1 %v102_v4  ;;  %v108_v26 = vunpack.c.l.s8.bf16 %v72_v22  ;;  %v140_v27 = vunpack.c.l.s8.bf16 %v88_v23  ;;  %v107_v32 = vunpack.c.l.s8.bf16 %v71_v28  ;;  %v139_v33 = vunpack.c.l.s8.bf16 %v87_v29  ;;  %v74_v37 = vld [vmem:[#allocation5 + $0x38] sm:$0xff]  ;;  %v73_v44 = vld [vmem:[#allocation5 + $0x30] sm:$0xff]  ;;  %v76_v50 = vld [vmem:[#allocation5 + $0x48] sm:$0xff]  ;;  %p431_p7 = por %p430_p6, %p429_p5 }
  0x4f   :  { %222 = vmatprep.subr.bf16.mxu0 %v134_v6  ;;  %v110_v34 = vunpack.c.h.s8.bf16 %v72_v22  ;;  %v142_v35 = vunpack.c.h.s8.bf16 %v88_v23  ;;  %v318_v36 = vcombine.high %v534_v30, %v534_v30  ;;  %v90_v38 = vld [vmem:[#allocation5 + $0xb8] sm:$0xff]  ;;  %v320_v39 = vcombine.high %v536_v31, %v536_v31  ;;  %v89_v45 = vld [vmem:[#allocation5 + $0xb0] sm:$0xff]  ;;  %v92_v51 = vld [vmem:[#allocation5 + $0xc8] sm:$0xff] }
  0x50   :  { %v109_v40 = vunpack.c.h.s8.bf16 %v71_v28  ;;  %v141_v41 = vunpack.c.h.s8.bf16 %v87_v29  ;;  %v112_v42 = vunpack.c.l.s8.bf16 %v74_v37  ;;  %v144_v43 = vunpack.c.l.s8.bf16 %v90_v38  ;;  %v75_v56 = vld [vmem:[#allocation5 + $0x40] sm:$0xff]  ;;  %v78_v62 = vld [vmem:[#allocation5 + $0x58] sm:$0xff]  ;;  %v77_v4 = vld [vmem:[#allocation5 + $0x50] sm:$0xff]  ;;  %p432_p8 = pnand %p431_p7, %p425_p4 }
  0x51   :  { %182 = vmatpush1.bf16.msra.mxu1 %v101_v12  ;;  %211 = vmatprep.mubr.bf16.mxu1 %v318_v36  ;;  %v111_v46 = vunpack.c.l.s8.bf16 %v73_v44  ;;  %v143_v47 = vunpack.c.l.s8.bf16 %v89_v45  ;;  %v114_v48 = vunpack.c.h.s8.bf16 %v74_v37  ;;  %v146_v49 = vunpack.c.h.s8.bf16 %v90_v38  ;;  %v91_v57 = vld [vmem:[#allocation5 + $0xc0] sm:$0xff]  ;;  %v94_v63 = vld [vmem:[#allocation5 + $0xd8] sm:$0xff]  ;;  %v93_v5 = vld [vmem:[#allocation5 + $0xd0] sm:$0xff] }
  0x52   :  { %223 = vmatpush1.bf16.msra.mxu0 %v133_v13  ;;  %183 = vmatprep.subr.bf16.mxu1 %v104_v14  ;;  %v113_v52 = vunpack.c.h.s8.bf16 %v73_v44  ;;  %v145_v53 = vunpack.c.h.s8.bf16 %v89_v45  ;;  %v116_v54 = vunpack.c.l.s8.bf16 %v76_v50  ;;  %v148_v55 = vunpack.c.l.s8.bf16 %v92_v51  ;;  %v80_v10 = vld [vmem:[#allocation5 + $0x68] sm:$0xff]  ;;  %v79_v16 = vld [vmem:[#allocation5 + $0x60] sm:$0xff]  ;;  %v82_v22 = vld [vmem:[#allocation5 + $0x78] sm:$0xff] }
  0x53   :  { %224 = vmatprep.subr.bf16.mxu0 %v136_v15  ;;  %252 = vmatprep.mubr.bf16.mxu0 %v320_v39  ;;  %v115_v58 = vunpack.c.l.s8.bf16 %v75_v56  ;;  %v147_v59 = vunpack.c.l.s8.bf16 %v91_v57  ;;  %v118_v60 = vunpack.c.h.s8.bf16 %v76_v50  ;;  %v150_v61 = vunpack.c.h.s8.bf16 %v92_v51  ;;  %v96_v11 = vld [vmem:[#allocation5 + $0xe8] sm:$0xff]  ;;  %v95_v17 = vld [vmem:[#allocation5 + $0xe0] sm:$0xff]  ;;  %v98_v23 = vld [vmem:[#allocation5 + $0xf8] sm:$0xff] }
  0x54   :  { %v117_v0 = vunpack.c.h.s8.bf16 %v75_v56  ;;  %v149_v1 = vunpack.c.h.s8.bf16 %v91_v57  ;;  %v120_v2 = vunpack.c.l.s8.bf16 %v78_v62  ;;  %v152_v3 = vunpack.c.l.s8.bf16 %v94_v63  ;;  %v81_v28 = vld [vmem:[#allocation5 + $0x70] sm:$0xff]  ;;  %v275_v45 = vld [vmem:[#allocation8] sm:$0x3] }
  0x55   :  { %184 = vmatpush1.bf16.msra.mxu1 %v103_v18  ;;  %v119_v6 = vunpack.c.l.s8.bf16 %v77_v4  ;;  %v151_v7 = vunpack.c.l.s8.bf16 %v93_v5  ;;  %v122_v8 = vunpack.c.h.s8.bf16 %v78_v62  ;;  %v154_v9 = vunpack.c.h.s8.bf16 %v94_v63  ;;  %v97_v29 = vld [vmem:[#allocation5 + $0xf0] sm:$0xff] }
  0x56   :  { %225 = vmatpush1.bf16.msra.mxu0 %v135_v19  ;;  %185 = vmatprep.subr.bf16.mxu1 %v106_v20  ;;  %v121_v12 = vunpack.c.h.s8.bf16 %v77_v4  ;;  %v153_v13 = vunpack.c.h.s8.bf16 %v93_v5  ;;  %v124_v14 = vunpack.c.l.s8.bf16 %v80_v10  ;;  %v156_v15 = vunpack.c.l.s8.bf16 %v96_v11 }
  0x57   :  { %226 = vmatprep.subr.bf16.mxu0 %v138_v21  ;;  %v123_v18 = vunpack.c.l.s8.bf16 %v79_v16  ;;  %v155_v19 = vunpack.c.l.s8.bf16 %v95_v17  ;;  %v126_v20 = vunpack.c.h.s8.bf16 %v80_v10  ;;  %v158_v21 = vunpack.c.h.s8.bf16 %v96_v11 }
  0x58   :  { %v129_v36 = vunpack.c.h.s8.bf16 %v81_v28  ;;  %v161_v37 = vunpack.c.h.s8.bf16 %v97_v29  ;;  %v317_v38 = vcombine.low %v534_v30, %v534_v30  ;;  %v319_v39 = vcombine.low %v536_v31, %v536_v31 }
  0x59   :  { %186 = vmatpush1.bf16.msra.mxu1 %v105_v24  ;;  %v125_v24 = vunpack.c.h.s8.bf16 %v79_v16 }
  0x5a   :  { %227 = vmatpush1.bf16.msra.mxu0 %v137_v25  ;;  %187 = vmatprep.subr.bf16.mxu1 %v108_v26  ;;  %v157_v25 = vunpack.c.h.s8.bf16 %v95_v17  ;;  %v128_v26 = vunpack.c.l.s8.bf16 %v82_v22 }
  0x5b   :  { %228 = vmatprep.subr.bf16.mxu0 %v140_v27  ;;  %v160_v27 = vunpack.c.l.s8.bf16 %v98_v23 }
  0x5d   :  { %188 = vmatpush1.bf16.msra.mxu1 %v107_v32  ;;  %v127_v32 = vunpack.c.l.s8.bf16 %v81_v28 }
  0x5e   :  { %229 = vmatpush1.bf16.msra.mxu0 %v139_v33  ;;  %189 = vmatprep.subr.bf16.mxu1 %v110_v34  ;;  %v159_v33 = vunpack.c.l.s8.bf16 %v97_v29  ;;  %v130_v34 = vunpack.c.h.s8.bf16 %v82_v22 }
  0x5f   :  { %230 = vmatprep.subr.bf16.mxu0 %v142_v35  ;;  %v162_v35 = vunpack.c.h.s8.bf16 %v98_v23 }
  0x61   :  { %190 = vmatpush1.bf16.msra.mxu1 %v109_v40  ;;  %v263_v40 = vlaneseq }
  0x62   :  { %231 = vmatpush1.bf16.msra.mxu0 %v141_v41  ;;  %191 = vmatprep.subr.bf16.mxu1 %v112_v42 }
  0x63   :  { %232 = vmatprep.subr.bf16.mxu0 %v144_v43  ;;  %v264_v41 = vshrl.u32 %v263_v40, 7  ;;  %v261_v43 = vld [vmem:[#allocation7] sm:$0x3] }
  0x65   :  { %192 = vmatpush1.bf16.msra.mxu1 %v111_v46  ;;  %v265_v42 = vsub.s32 0, %v264_v41  ;;  %v269_v44 = vsub.s32 1, %v264_v41 }
  0x66   :  { %233 = vmatpush1.bf16.msra.mxu0 %v143_v47  ;;  %193 = vmatprep.subr.bf16.mxu1 %v114_v48 }
  0x67   :  { %234 = vmatprep.subr.bf16.mxu0 %v146_v49  ;;  %v266_v46 = vrot.slane %v261_v43, %v265_v42  ;;  %v270_v49 = vrot.slane %v261_v43, %v269_v44  ;;  %v280_v51 = vrot.slane %v275_v45, %v265_v42  ;;  %v284_v31 = vrot.slane %v275_v45, %v269_v44 }
  0x69   :  { %194 = vmatpush1.bf16.msra.mxu1 %v113_v52 }
  0x6a   :  { %235 = vmatpush1.bf16.msra.mxu0 %v145_v53  ;;  %195 = vmatprep.subr.bf16.mxu1 %v116_v54 }
  0x6b   :  { %236 = vmatprep.subr.bf16.mxu0 %v148_v55 }
  0x6d   :  { %196 = vmatpush1.bf16.msra.mxu1 %v115_v58 }
  0x6e   :  { %237 = vmatpush1.bf16.msra.mxu0 %v147_v59  ;;  %197 = vmatprep.subr.bf16.mxu1 %v118_v60 }
  0x6f   :  { %238 = vmatprep.subr.bf16.mxu0 %v150_v61 }
  0x71   :  { %198 = vmatpush1.bf16.msra.mxu1 %v117_v0 }
  0x72   :  { %239 = vmatpush1.bf16.msra.mxu0 %v149_v1  ;;  %199 = vmatprep.subr.bf16.mxu1 %v120_v2 }
  0x73   :  { %240 = vmatprep.subr.bf16.mxu0 %v152_v3 }
  0x75   :  { %200 = vmatpush1.bf16.msra.mxu1 %v119_v6 }
  0x76   :  { %241 = vmatpush1.bf16.msra.mxu0 %v151_v7  ;;  %201 = vmatprep.subr.bf16.mxu1 %v122_v8 }
  0x77   :  { %242 = vmatprep.subr.bf16.mxu0 %v154_v9 }
  0x79   :  { %202 = vmatpush1.bf16.msra.mxu1 %v121_v12 }
  0x7a   :  { %243 = vmatpush1.bf16.msra.mxu0 %v153_v13  ;;  %203 = vmatprep.subr.bf16.mxu1 %v124_v14 }
  0x7b   :  { %244 = vmatprep.subr.bf16.mxu0 %v156_v15 }
  0x7d   :  { %204 = vmatpush1.bf16.msra.mxu1 %v123_v18 }
  0x7e   :  { %245 = vmatpush1.bf16.msra.mxu0 %v155_v19  ;;  %205 = vmatprep.subr.bf16.mxu1 %v126_v20 }
  0x7f   :  { %246 = vmatprep.subr.bf16.mxu0 %v158_v21 }
  0x81   :  { %206 = vmatpush1.bf16.msra.mxu1 %v125_v24 }
  0x82   :  { %247 = vmatpush1.bf16.msra.mxu0 %v157_v25  ;;  %207 = vmatprep.subr.bf16.mxu1 %v128_v26 }
  0x83   :  { %248 = vmatprep.subr.bf16.mxu0 %v160_v27 }
  0x85   :  { %208 = vmatpush1.bf16.msra.mxu1 %v127_v32 }
  0x86   :  { %249 = vmatpush1.bf16.msra.mxu0 %v159_v33  ;;  %209 = vmatprep.subr.bf16.mxu1 %v130_v34 }
  0x87   :  { %250 = vmatprep.subr.bf16.mxu0 %v162_v35 }
  0x89   :  { %210 = vmatpush1.bf16.msra.mxu1 %v129_v36 }
  0x8a   :  { %251 = vmatpush1.bf16.msra.mxu0 %v161_v37 }
  0x8c   :  { %212 = vmatmul.mubr.bf16.vlgmr.msra.gmra.mrb[0].mxu1 %v317_v38 }
  0x8d   :  { %253 = vmatmul.mubr.bf16.vlgmr.msra.gmra.mrb[0].mxu0 %v319_v39 }
 0x15f   :  { %v213_v47 = vpop.f32.mrb[0].mxu1 }
 0x160   :  { %v254_v48 = vpop.f32.mrb[0].mxu0  ;;  %v215_v30 = vpop.f32.mrb[1].mxu1 }
 0x161   :  { %v255_v50 = vadd.f32 %v254_v48, %v213_v47  ;;  %v256_v52 = vpop.f32.mrb[1].mxu0  ;;  %v217_v54 = vpop.f32.mrb[2].mxu1 }
 0x162   :  { %v257_v53 = vadd.f32 %v256_v52, %v215_v30  ;;  %v258_v55 = vpop.f32.mrb[2].mxu0  ;;  %v218_v57 = vpop.f32.mrb[3].mxu1 }
 0x163   :  { %v273_v56 = vmul.f32 %v266_v46, %v255_v50  ;;  %v259_v58 = vpop.f32.mrb[3].mxu0 }
 0x164   :  { %v274_v59 = vmul.f32 %v270_v49, %v257_v53 }
 0x165   :  { %v287_v60 = vadd.f32 %v280_v51, %v273_v56 }
 0x166   :  { %v288_v61 = vadd.f32 %v284_v31, %v274_v59 }
 0x167   :  { %v289_v62 = vmax.f32 %v287_v60, 0.0 }
 0x168   :  { %v290_v63 = vmax.f32 %v288_v61, 0.0 }
 0x16a   :  { %v322_v0 = vpack.c.bf16 %v290_v63, %v289_v62 }
 0x16c   :  { %299 = vst [vmem:[#allocation10] sm:$0xff] %v322_v0 }
 0x16d   :  { %435 = shalt.err (!%p432_p8)
}
 0x16e   :  { %s436_s1 = scalar_lea.hbm %s562_s4, 128 }
 0x16f   :  { %p437_p9 = scmp.ne.s32.totalorder %s562_s4, %s436_s1  ;;  %p440_p10 = scmp.lt.u32.totalorder %s436_s1, %s562_s4 }
 0x171   :  { %p442_p11 = pnand %p440_p10, %p437_p9 }
 0x173   :  { %445 = shalt.err (!%p442_p11)
}
 0x174   :  { %309 = dma.vmem_to_hbm [thread:$0]  %s307_s10, 128, %s562_s4, [#allocation4]  }
 0x175   :  { %452 = dma.done.wait [#allocation4], 128  }
 0x176   :  { %453 = vsyncadd [#allocation4], 4294967168 }
 0x177   :  { %313 = vsyncpa [#allocation3], 1 }
 0x178   :  { %314 = vsyncpa [#allocation6], 1 }
 0x179   :  { %315 = vsyncpa [#allocation9], 1 }
 0x17a   :  { %316 = vsyncpa [#allocation4], 1 }

</bundles_post_ra>
